<compile_context>
chip_gen: v7x
topology: tpu7x:2x2x1
jax: 0.10.0
libtpu: 0.0.40
codegen_flags: <defaults>
</compile_context>

<pallas_src>
import functools

import jax
import jax.numpy as jnp
from jax.experimental import pallas as pl
from jax.experimental.pallas import tpu as pltpu


def _head_softmax(out, wo_ref, bo_ref):
    """Classifier head: Linear(DPAD -> OPAD) + Softmax over lane-dense OPAD columns.

    Padded head columns have zero weights and a -1e30 bias, so their exp() is exactly 0
    and they hold ~0 probability mass (the wrapper slices them away).
    """
    logits = (jnp.dot(out.astype(jnp.bfloat16), wo_ref[...],
                      preferred_element_type=jnp.float32)
              + bo_ref[...])
    z = logits - jnp.max(logits, axis=1, keepdims=True)
    e = jnp.exp(z)
    # EUP-side approximate reciprocal: rows sum to 1 within ~1e-3 (documented trade-off).
    inv_denom = pl.reciprocal(jnp.sum(e, axis=1, keepdims=True), approx=True)
    return e * inv_denom


def _layer_step(out, w, b, d):
    """One highway layer on an f32 carry: out + gate * (relu(lin) - out)."""
    fused = (jnp.dot(out.astype(jnp.bfloat16), w, preferred_element_type=jnp.float32) + b)
    # sigmoid(z) == 0.5*tanh(z/2) + 0.5: a single EUP tanh instead of exp + divide.
    gate = 0.5 * jnp.tanh(0.5 * fused[:, :d]) + 0.5
    lin = fused[:, d:]
    # Equivalent to gate*relu(lin) + (1-gate)*out with one fewer mul/sub per element.
    return out + gate * (jnp.maximum(lin, 0.0) - out)


def highway_resident_kernel(x_ref, wtl_ref, btl_ref, wo_ref, bo_ref, o_ref, *, n_layers, d):
    """All L fused layer weights VMEM-resident; one batch tile per grid step."""
    out = x_ref[...].astype(jnp.float32)

    if n_layers >= 8:
        # Deep stacks: a real loop bounds live ranges / instruction-stream size.
        out = jax.lax.fori_loop(
            0, n_layers,
            lambda l, o: _layer_step(o, wtl_ref[l], btl_ref[l], d),
            out)
    else:
        for layer in range(n_layers):
            out = _layer_step(out, wtl_ref[layer], btl_ref[layer], d)

    o_ref[...] = _head_softmax(out, wo_ref, bo_ref).astype(o_ref.dtype)


def highway_stream_kernel(x_ref, wtl_ref, btl_ref, wo_ref, bo_ref, o_ref, acc_ref,
                          *, n_layers, d):
    """Layer-streaming path (v7x / large models): grid = (batch tiles, L).

    One fused (D, 2D) layer weight is DMA'd per step (double-buffered, so layer l+1's
    fetch overlaps layer l's compute); the activation is carried in a VMEM scratch and
    the head + softmax run on the last layer step.
    """
    l = pl.program_id(1)

    @pl.when(l == 0)
    def _():
        acc_ref[...] = x_ref[...].astype(jnp.float32)

    out = _layer_step(acc_ref[...], wtl_ref[0], btl_ref[0], d)
    acc_ref[...] = out

    @pl.when(l == n_layers - 1)
    def _():
        o_ref[...] = _head_softmax(out, wo_ref, bo_ref).astype(o_ref.dtype)


def _single_buffered_spec(shape, index_map):
    """Grid-invariant operand: single-buffer it (double-buffering a constant block is
    pure VMEM waste). Falls back to the default spec on JAX versions without pipeline_mode."""
    try:
        return pl.BlockSpec(shape, index_map, pipeline_mode=pl.Buffered(1))
    except Exception:  # pragma: no cover - older jax
        return pl.BlockSpec(shape, index_map)


def highway_forward(x, wt, bt, wl, bl, wo, bo, *, block_b=256, force_stream=False):
    B, D = x.shape
    O = wo.shape[1]
    L = wt.shape[0]
    DPAD = pl.cdiv(max(D, 128), 128) * 128   # lane-aligned feature width
    OPAD = pl.cdiv(max(O, 128), 128) * 128   # lane-dense head width
    SUB = 16                                 # sublane granularity for bf16 input tiles

    # ---- host-side weight prep (once): pad feature dims, fuse gate|linear, cast ----
    def pad_w(a):    # (L, D, D) -> (L, DPAD, DPAD), zero pad
        return jnp.pad(a, ((0, 0), (0, DPAD - D), (0, DPAD - D)))

    def pad_b(a):    # (L, 1, D) -> (L, 1, DPAD), zero pad
        return jnp.pad(a, ((0, 0), (0, 0), (0, DPAD - D)))

    # Padded feature columns stay exactly 0 through every layer: padded weight rows/cols
    # and biases are 0, so lin_pad == 0 and out_pad starts (and therefore stays) 0.
    wtl = jnp.concatenate([pad_w(wt), pad_w(wl)], axis=-1).astype(jnp.bfloat16)  # (L,DPAD,2DPAD)
    btl = jnp.concatenate([pad_b(bt), pad_b(bl)], axis=-1).astype(jnp.float32)   # (L,1,2DPAD)
    wo_p = jnp.zeros((DPAD, OPAD), jnp.bfloat16).at[:D, :O].set(wo.astype(jnp.bfloat16))
    bo_p = jnp.full((1, OPAD), -1e30, jnp.float32).at[:, :O].set(bo.astype(jnp.float32))

    # ---- generation-aware VMEM budget (~75% of physical: ~96 MiB v5e/v6e, ~48 MiB v7x) ----
    try:
        vmem_phys = int(getattr(pltpu.get_tpu_info(), "vmem_capacity_bytes", 64 << 20))
    except Exception:  # pragma: no cover - non-TPU / older jax
        vmem_phys = 64 << 20
    vmem_cap = (3 * vmem_phys) // 4
    headroom = 4 << 20

    weight_bytes = wtl.size * 2 + btl.size * 4
    head_bytes = wo_p.size * 2 + bo_p.size * 4
    per_layer_bytes = DPAD * (2 * DPAD) * 2 + (2 * DPAD) * 4

    def need_bytes(tb_, resident):
        w = weight_bytes if resident else 2 * per_layer_bytes + tb_ * DPAD * 4  # 2 layer bufs + carry
        io = 2 * tb_ * DPAD * 2 + 2 * tb_ * OPAD * 4       # double-buffered x (bf16) / o (f32) tiles
        interm = tb_ * (4 * DPAD + 3 * OPAD) * 4            # carry, fused, logits/exp temporaries
        return w + head_bytes + io + interm

    # ---- batch tile: big tiles amortize per-step + MXU fill/drain overhead; give the
    # parallel axis >= 2 steps when possible so both v7x TensorCores have work ----
    tb = min(block_b, max(SUB, pl.cdiv(B, SUB) * SUB))
    if pl.cdiv(B, tb) < 2:
        tb = min(tb, max(SUB, pl.cdiv(pl.cdiv(B, 2), SUB) * SUB))

    stream_layers = force_stream or (need_bytes(tb, resident=True) + headroom > vmem_cap)
    if stream_layers:
        while tb > SUB and need_bytes(tb, resident=False) + headroom > vmem_cap:
            tb = max(SUB, pl.cdiv(tb // 2, SUB) * SUB)

    b_pad = pl.cdiv(B, tb) * tb
    x_p = x.astype(jnp.bfloat16)                 # halves the per-tile input DMA bytes
    if b_pad != B or DPAD != D:
        x_p = jnp.pad(x_p, ((0, b_pad - B), (0, DPAD - D)))

    vmem_limit = int(min(max(need_bytes(tb, resident=not stream_layers) + headroom,
                             16 << 20), vmem_cap))
    out_shape = jax.ShapeDtypeStruct((b_pad, OPAD), jnp.float32)

    if not stream_layers:
        out_p = pl.pallas_call(
            functools.partial(highway_resident_kernel, n_layers=L, d=DPAD),
            out_shape=out_shape,
            grid=(b_pad // tb,),
            in_specs=[
                pl.BlockSpec((tb, DPAD), lambda i: (i, 0)),                      # x: batch-tiled
                _single_buffered_spec((L, DPAD, 2 * DPAD), lambda i: (0, 0, 0)),  # fused weights
                _single_buffered_spec((L, 1, 2 * DPAD), lambda i: (0, 0, 0)),     # fused biases
                _single_buffered_spec((DPAD, OPAD), lambda i: (0, 0)),            # head weight
                _single_buffered_spec((1, OPAD), lambda i: (0, 0)),               # head bias
            ],
            out_specs=pl.BlockSpec((tb, OPAD), lambda i: (i, 0)),
            compiler_params=pltpu.CompilerParams(
                dimension_semantics=("parallel",),
                vmem_limit_bytes=vmem_limit),
        )(x_p, wtl, btl, wo_p, bo_p)
    else:
        out_p = pl.pallas_call(
            functools.partial(highway_stream_kernel, n_layers=L, d=DPAD),
            out_shape=out_shape,
            grid=(b_pad // tb, L),
            in_specs=[
                pl.BlockSpec((tb, DPAD), lambda i, l: (i, 0)),                   # x: per batch tile
                pl.BlockSpec((1, DPAD, 2 * DPAD), lambda i, l: (l, 0, 0)),       # one layer / step
                pl.BlockSpec((1, 1, 2 * DPAD), lambda i, l: (l, 0, 0)),
                _single_buffered_spec((DPAD, OPAD), lambda i, l: (0, 0)),        # head resident
                _single_buffered_spec((1, OPAD), lambda i, l: (0, 0)),
            ],
            out_specs=pl.BlockSpec((tb, OPAD), lambda i, l: (i, 0)),
            scratch_shapes=[pltpu.VMEM((tb, DPAD), jnp.float32)],                # activation carry
            compiler_params=pltpu.CompilerParams(
                dimension_semantics=("parallel", "arbitrary"),
                vmem_limit_bytes=vmem_limit),
        )(x_p, wtl, btl, wo_p, bo_p)

    return out_p[:B, :O]


def reference_forward(x, wt, bt, wl, bl, wo, bo):
    out = x
    for layer in range(wt.shape[0]):
        gate = jax.nn.sigmoid(out @ wt[layer] + bt[layer])
        out = gate * jax.nn.relu(out @ wl[layer] + bl[layer]) + (1.0 - gate) * out
    logits = out @ wo + bo
    return jax.nn.softmax(logits, axis=1)


if __name__ == "__main__":
    # Small shapes consistent with the module's forward: x is (batch, input_size).
    B, D, O, L = 8, 128, 16, 3
    GATE_BIAS = -20.0

    key = jax.random.PRNGKey(0)
    k_x, k_wt, k_wl, k_bl, k_wo, k_bo = jax.random.split(key, 6)

    bound = 1.0 / jnp.sqrt(D)  # matches PyTorch Linear's default uniform bound
    x = jax.random.normal(k_x, (B, D), dtype=jnp.float32)
    wt = jax.random.uniform(k_wt, (L, D, D), jnp.float32, -bound, bound)
    bt = jnp.full((L, 1, D), GATE_BIAS, dtype=jnp.float32)  # transform_gate.bias.fill_(-20)
    wl = jax.random.uniform(k_wl, (L, D, D), jnp.float32, -bound, bound)
    bl = jax.random.uniform(k_bl, (L, 1, D), jnp.float32, -bound, bound)
    wo = jax.random.uniform(k_wo, (D, O), jnp.float32, -bound, bound)
    bo = jax.random.uniform(k_bo, (1, O), jnp.float32, -bound, bound)

    ref = jax.block_until_ready(reference_forward(x, wt, bt, wl, bl, wo, bo))

    # Default (resident-weights) path.
    out = jax.block_until_ready(highway_forward(x, wt, bt, wl, bl, wo, bo))
    assert out.shape == (B, O)
    # bf16 matmul operands / bf16 x DMA + approx reciprocal -> relaxed tolerance on probs.
    assert jnp.allclose(out, ref, atol=1e-2, rtol=1e-2), "resident path mismatch vs reference"
    assert jnp.allclose(jnp.sum(out, axis=1), 1.0, atol=1e-2), "softmax rows must sum to ~1"

    # Layer-streaming path (taken automatically when L*D*2D weights exceed the VMEM budget,
    # e.g. deep/wide stacks on v7x's 64 MiB VMEM). Exercised here for correctness.
    out_s = jax.block_until_ready(
        highway_forward(x, wt, bt, wl, bl, wo, bo, force_stream=True))
    assert jnp.allclose(out_s, ref, atol=1e-2, rtol=1e-2), "streaming path mismatch vs reference"

    print("KERNEL_OK")
</pallas_src>

<mosaic_0001>
module attributes {stable_mosaic.version = 11 : i64} {
  func.func @highway_resident_kernel(%arg0: i32, %arg1: memref<16x128xbf16, #tpu.memory_space<vmem>>, %arg2: memref<3x128x256xbf16, #tpu.memory_space<vmem>>, %arg3: memref<3x1x256xf32, #tpu.memory_space<vmem>>, %arg4: memref<128x128xbf16, #tpu.memory_space<vmem>>, %arg5: memref<1x128xf32, #tpu.memory_space<vmem>>, %arg6: memref<16x128xf32, #tpu.memory_space<vmem>>) attributes {dimension_semantics = [#tpu.dimension_semantics<parallel>], iteration_bounds = array<i64: 1>, scalar_prefetch = 0 : i64, scratch_operands = 0 : i64, tpu.core_type = #tpu.core_type<tc>, window_params = [{transform_indices = @transform_0, window_bounds = array<i64: 16, 128>}, {pipeline_mode = #tpu.pipeline_mode<synchronous>, transform_indices = @transform_1, window_bounds = array<i64: 3, 128, 256>}, {pipeline_mode = #tpu.pipeline_mode<synchronous>, transform_indices = @transform_2, window_bounds = array<i64: 3, 1, 256>}, {pipeline_mode = #tpu.pipeline_mode<synchronous>, transform_indices = @transform_3, window_bounds = array<i64: 128, 128>}, {pipeline_mode = #tpu.pipeline_mode<synchronous>, transform_indices = @transform_4, window_bounds = array<i64: 1, 128>}, {transform_indices = @transform_5, window_bounds = array<i64: 16, 128>}]} {
    %c0 = arith.constant 0 : index
    %c0_0 = arith.constant 0 : index
    %0 = vector.load %arg1[%c0, %c0_0] : memref<16x128xbf16, #tpu.memory_space<vmem>>, vector<16x128xbf16>
    %1 = arith.extf %0 : vector<16x128xbf16> to vector<16x128xf32>
    %c0_1 = arith.constant 0 : index
    %c0_2 = arith.constant 0 : index
    %c0_3 = arith.constant 0 : index
    %2 = vector.load %arg2[%c0_1, %c0_2, %c0_3] : memref<3x128x256xbf16, #tpu.memory_space<vmem>>, vector<1x128x256xbf16>
    %3 = vector.shape_cast %2 : vector<1x128x256xbf16> to vector<128x256xbf16>
    %c0_4 = arith.constant 0 : index
    %c0_5 = arith.constant 0 : index
    %c0_6 = arith.constant 0 : index
    %4 = vector.load %arg3[%c0_4, %c0_5, %c0_6] : memref<3x1x256xf32, #tpu.memory_space<vmem>>, vector<1x1x256xf32>
    %5 = vector.shape_cast %4 : vector<1x1x256xf32> to vector<1x256xf32>
    %6 = arith.truncf %1 : vector<16x128xf32> to vector<16x128xbf16>
    %cst = arith.constant dense<0.000000e+00> : vector<16x256xf32>
    %7 = tpu.matmul %6, %3, %cst {dimension_numbers = #tpu.dot_dimension_numbers<[1], [0], [0], [1], [0, 0, 1, 1], [], []>} : vector<16x128xbf16>, vector<128x256xbf16>, vector<16x256xf32> -> vector<16x256xf32>
    %8 = vector.broadcast %5 : vector<1x256xf32> to vector<16x256xf32>
    %9 = arith.addf %7, %8 : vector<16x256xf32>
    %10 = vector.extract_strided_slice %9 {offsets = [0, 0], sizes = [16, 128], strides = [1, 1]} : vector<16x256xf32> to vector<16x128xf32>
    %cst_7 = arith.constant 5.000000e-01 : f32
    %11 = vector.broadcast %cst_7 : f32 to vector<16x128xf32>
    %12 = arith.mulf %11, %10 : vector<16x128xf32>
    %13 = math.tanh %12 : vector<16x128xf32>
    %cst_8 = arith.constant 5.000000e-01 : f32
    %14 = vector.broadcast %cst_8 : f32 to vector<16x128xf32>
    %15 = arith.mulf %14, %13 : vector<16x128xf32>
    %cst_9 = arith.constant 5.000000e-01 : f32
    %16 = vector.broadcast %cst_9 : f32 to vector<16x128xf32>
    %17 = arith.addf %15, %16 : vector<16x128xf32>
    %18 = vector.extract_strided_slice %9 {offsets = [0, 128], sizes = [16, 128], strides = [1, 1]} : vector<16x256xf32> to vector<16x128xf32>
    %cst_10 = arith.constant 0.000000e+00 : f32
    %19 = vector.broadcast %cst_10 : f32 to vector<16x128xf32>
    %20 = arith.maximumf %18, %19 : vector<16x128xf32>
    %21 = arith.subf %20, %1 : vector<16x128xf32>
    %22 = arith.mulf %17, %21 : vector<16x128xf32>
    %23 = arith.addf %1, %22 : vector<16x128xf32>
    %c1 = arith.constant 1 : index
    %c0_11 = arith.constant 0 : index
    %c0_12 = arith.constant 0 : index
    %24 = vector.load %arg2[%c1, %c0_11, %c0_12] : memref<3x128x256xbf16, #tpu.memory_space<vmem>>, vector<1x128x256xbf16>
    %25 = vector.shape_cast %24 : vector<1x128x256xbf16> to vector<128x256xbf16>
    %c1_13 = arith.constant 1 : index
    %c0_14 = arith.constant 0 : index
    %c0_15 = arith.constant 0 : index
    %26 = vector.load %arg3[%c1_13, %c0_14, %c0_15] : memref<3x1x256xf32, #tpu.memory_space<vmem>>, vector<1x1x256xf32>
    %27 = vector.shape_cast %26 : vector<1x1x256xf32> to vector<1x256xf32>
    %28 = arith.truncf %23 : vector<16x128xf32> to vector<16x128xbf16>
    %cst_16 = arith.constant dense<0.000000e+00> : vector<16x256xf32>
    %29 = tpu.matmul %28, %25, %cst_16 {dimension_numbers = #tpu.dot_dimension_numbers<[1], [0], [0], [1], [0, 0, 1, 1], [], []>} : vector<16x128xbf16>, vector<128x256xbf16>, vector<16x256xf32> -> vector<16x256xf32>
    %30 = vector.broadcast %27 : vector<1x256xf32> to vector<16x256xf32>
    %31 = arith.addf %29, %30 : vector<16x256xf32>
    %32 = vector.extract_strided_slice %31 {offsets = [0, 0], sizes = [16, 128], strides = [1, 1]} : vector<16x256xf32> to vector<16x128xf32>
    %cst_17 = arith.constant 5.000000e-01 : f32
    %33 = vector.broadcast %cst_17 : f32 to vector<16x128xf32>
    %34 = arith.mulf %33, %32 : vector<16x128xf32>
    %35 = math.tanh %34 : vector<16x128xf32>
    %cst_18 = arith.constant 5.000000e-01 : f32
    %36 = vector.broadcast %cst_18 : f32 to vector<16x128xf32>
    %37 = arith.mulf %36, %35 : vector<16x128xf32>
    %cst_19 = arith.constant 5.000000e-01 : f32
    %38 = vector.broadcast %cst_19 : f32 to vector<16x128xf32>
    %39 = arith.addf %37, %38 : vector<16x128xf32>
    %40 = vector.extract_strided_slice %31 {offsets = [0, 128], sizes = [16, 128], strides = [1, 1]} : vector<16x256xf32> to vector<16x128xf32>
    %cst_20 = arith.constant 0.000000e+00 : f32
    %41 = vector.broadcast %cst_20 : f32 to vector<16x128xf32>
    %42 = arith.maximumf %40, %41 : vector<16x128xf32>
    %43 = arith.subf %42, %23 : vector<16x128xf32>
    %44 = arith.mulf %39, %43 : vector<16x128xf32>
    %45 = arith.addf %23, %44 : vector<16x128xf32>
    %c2 = arith.constant 2 : index
    %c0_21 = arith.constant 0 : index
    %c0_22 = arith.constant 0 : index
    %46 = vector.load %arg2[%c2, %c0_21, %c0_22] : memref<3x128x256xbf16, #tpu.memory_space<vmem>>, vector<1x128x256xbf16>
    %47 = vector.shape_cast %46 : vector<1x128x256xbf16> to vector<128x256xbf16>
    %c2_23 = arith.constant 2 : index
    %c0_24 = arith.constant 0 : index
    %c0_25 = arith.constant 0 : index
    %48 = vector.load %arg3[%c2_23, %c0_24, %c0_25] : memref<3x1x256xf32, #tpu.memory_space<vmem>>, vector<1x1x256xf32>
    %49 = vector.shape_cast %48 : vector<1x1x256xf32> to vector<1x256xf32>
    %50 = arith.truncf %45 : vector<16x128xf32> to vector<16x128xbf16>
    %cst_26 = arith.constant dense<0.000000e+00> : vector<16x256xf32>
    %51 = tpu.matmul %50, %47, %cst_26 {dimension_numbers = #tpu.dot_dimension_numbers<[1], [0], [0], [1], [0, 0, 1, 1], [], []>} : vector<16x128xbf16>, vector<128x256xbf16>, vector<16x256xf32> -> vector<16x256xf32>
    %52 = vector.broadcast %49 : vector<1x256xf32> to vector<16x256xf32>
    %53 = arith.addf %51, %52 : vector<16x256xf32>
    %54 = vector.extract_strided_slice %53 {offsets = [0, 0], sizes = [16, 128], strides = [1, 1]} : vector<16x256xf32> to vector<16x128xf32>
    %cst_27 = arith.constant 5.000000e-01 : f32
    %55 = vector.broadcast %cst_27 : f32 to vector<16x128xf32>
    %56 = arith.mulf %55, %54 : vector<16x128xf32>
    %57 = math.tanh %56 : vector<16x128xf32>
    %cst_28 = arith.constant 5.000000e-01 : f32
    %58 = vector.broadcast %cst_28 : f32 to vector<16x128xf32>
    %59 = arith.mulf %58, %57 : vector<16x128xf32>
    %cst_29 = arith.constant 5.000000e-01 : f32
    %60 = vector.broadcast %cst_29 : f32 to vector<16x128xf32>
    %61 = arith.addf %59, %60 : vector<16x128xf32>
    %62 = vector.extract_strided_slice %53 {offsets = [0, 128], sizes = [16, 128], strides = [1, 1]} : vector<16x256xf32> to vector<16x128xf32>
    %cst_30 = arith.constant 0.000000e+00 : f32
    %63 = vector.broadcast %cst_30 : f32 to vector<16x128xf32>
    %64 = arith.maximumf %62, %63 : vector<16x128xf32>
    %65 = arith.subf %64, %45 : vector<16x128xf32>
    %66 = arith.mulf %61, %65 : vector<16x128xf32>
    %67 = arith.addf %45, %66 : vector<16x128xf32>
    %68 = arith.truncf %67 : vector<16x128xf32> to vector<16x128xbf16>
    %c0_31 = arith.constant 0 : index
    %c0_32 = arith.constant 0 : index
    %69 = vector.load %arg4[%c0_31, %c0_32] : memref<128x128xbf16, #tpu.memory_space<vmem>>, vector<128x128xbf16>
    %cst_33 = arith.constant dense<0.000000e+00> : vector<16x128xf32>
    %70 = tpu.matmul %68, %69, %cst_33 {dimension_numbers = #tpu.dot_dimension_numbers<[1], [0], [0], [1], [0, 0, 1, 1], [], []>} : vector<16x128xbf16>, vector<128x128xbf16>, vector<16x128xf32> -> vector<16x128xf32>
    %c0_34 = arith.constant 0 : index
    %c0_35 = arith.constant 0 : index
    %71 = vector.load %arg5[%c0_34, %c0_35] : memref<1x128xf32, #tpu.memory_space<vmem>>, vector<1x128xf32>
    %72 = vector.broadcast %71 : vector<1x128xf32> to vector<16x128xf32>
    %73 = arith.addf %70, %72 : vector<16x128xf32>
    %cst_36 = arith.constant dense<0xFF800000> : vector<16xf32>
    %74 = vector.multi_reduction <maximumf>, %73, %cst_36 [1] : vector<16x128xf32> to vector<16xf32>
    %75 = vector.shape_cast %74 : vector<16xf32> to vector<16x1xf32>
    %76 = vector.broadcast %75 : vector<16x1xf32> to vector<16x128xf32>
    %77 = arith.subf %73, %76 : vector<16x128xf32>
    %78 = math.exp %77 : vector<16x128xf32>
    %cst_37 = arith.constant dense<0.000000e+00> : vector<16xf32>
    %79 = vector.multi_reduction <add>, %78, %cst_37 [1] : vector<16x128xf32> to vector<16xf32>
    %80 = vector.shape_cast %79 : vector<16xf32> to vector<16x1xf32>
    %81 = tpu.reciprocal %80 {approx = true} : vector<16x1xf32> -> vector<16x1xf32>
    %82 = vector.broadcast %81 : vector<16x1xf32> to vector<16x128xf32>
    %83 = arith.mulf %78, %82 : vector<16x128xf32>
    %c0_38 = arith.constant 0 : index
    %c0_39 = arith.constant 0 : index
    %84 = vector.load %arg6[%c0_38, %c0_39] : memref<16x128xf32, #tpu.memory_space<vmem>>, vector<16x128xf32>
    tpu.vector_store %arg6[%c0_38, %c0_39], %83 {strides = array<i32>} : memref<16x128xf32, #tpu.memory_space<vmem>>, vector<16x128xf32>,
    return
  }
  func.func @transform_0(%arg0: i32) -> (i32, i32) {
    %c0_i32 = arith.constant 0 : i32
    %c0_i32_0 = arith.constant 0 : i32
    return %arg0, %c0_i32 : i32, i32
  }
  func.func @transform_1(%arg0: i32) -> (i32, i32, i32) {
    %c0_i32 = arith.constant 0 : i32
    %c0_i32_0 = arith.constant 0 : i32
    %c0_i32_1 = arith.constant 0 : i32
    %c0_i32_2 = arith.constant 0 : i32
    return %c0_i32, %c0_i32_0, %c0_i32_1 : i32, i32, i32
  }
  func.func @transform_2(%arg0: i32) -> (i32, i32, i32) {
    %c0_i32 = arith.constant 0 : i32
    %c0_i32_0 = arith.constant 0 : i32
    %c0_i32_1 = arith.constant 0 : i32
    %c0_i32_2 = arith.constant 0 : i32
    return %c0_i32, %c0_i32_0, %c0_i32_1 : i32, i32, i32
  }
  func.func @transform_3(%arg0: i32) -> (i32, i32) {
    %c0_i32 = arith.constant 0 : i32
    %c0_i32_0 = arith.constant 0 : i32
    %c0_i32_1 = arith.constant 0 : i32
    return %c0_i32, %c0_i32_0 : i32, i32
  }
  func.func @transform_4(%arg0: i32) -> (i32, i32) {
    %c0_i32 = arith.constant 0 : i32
    %c0_i32_0 = arith.constant 0 : i32
    %c0_i32_1 = arith.constant 0 : i32
    return %c0_i32, %c0_i32_0 : i32, i32
  }
  func.func @transform_5(%arg0: i32) -> (i32, i32) {
    %c0_i32 = arith.constant 0 : i32
    %c0_i32_0 = arith.constant 0 : i32
    return %arg0, %c0_i32 : i32, i32
  }
}

</mosaic_0001>

<bundles_post_ra>
// kernel: tpu_custom_call.1
= control target key start
LH: loop header
LB: loop body
LE: loop exit
PB: predicated region body
PF: predicated region fallthrough
CT: control target
= control target key end

     0   :  { %10 = vsyncpa [#allocation3], 0  ;;  %s1159_s0 = inlined_call_operand.hbm [shape: bf16[16,128], index: 0, kind: input, shape index: {}]   ;;  %s1160_s1 = inlined_call_operand.hbm [shape: bf16[3,128,256], index: 1, kind: input, shape index: {}]   ;;  %s1161_s2 = inlined_call_operand.vmem [shape: f32[3,1,256], index: 2, kind: input, shape index: {}]   ;;  %s1162_s3 = inlined_call_operand.hbm [shape: bf16[128,128], index: 3, kind: input, shape index: {}]   ;;  %s1163_s4 = inlined_call_operand.vmem [shape: f32[1,128], index: 4, kind: input, shape index: {}]   ;;  %s1164_s5 = inlined_call_operand.hbm [shape: f32[16,128], index: 5, kind: output, shape index: {}]  }
   0x1   :  { %11 = vsyncpa [#allocation6], 0 }
   0x2   :  { %12 = vsyncpa [#allocation4], 0  ;;  %s1027_s18 = smov [#allocation5]   ;;  %s933_s22 = scalar_lea.hbm %s1160_s1, 6144 }
   0x3   :  { %s30_s19 = sshll.u32 %s1027_s18, 4  ;;  %p934_p0 = scmp.ne.s32.totalorder %s1160_s1, %s933_s22  ;;  %s31_s19 = int_to_ptr.vmem [resolvable:$true] %s30_s19 }
   0x4   :  { %p937_p1 = scmp.lt.u32.totalorder %s933_s22, %s1160_s1 }
   0x6   :  { %p939_p2 = pnand %p937_p1, %p934_p0 }
   0x8   :  { %942 = shalt.err (!%p939_p2)
}
   0x9   :  { %s943_s27 = scalar_lea.vmem %s31_s19, 6144  ;;  %p948_p4 = scmp.lt.s32.totalorder %s31_s19, %s31_s19 }
   0xa   :  { %p944_p3 = scmp.ne.s32.totalorder %s31_s19, %s943_s27  ;;  %p949_p5 = scmp.lt.s32.totalorder %s943_s27, %s943_s27 }
   0xc   :  { %p950_p6 = por %p949_p5, %p948_p4 }
   0xe   :  { %p951_p7 = pnand %p950_p6, %p944_p3 }
  0x10   :  { %954 = shalt.err (!%p951_p7)
}
  0x11   :  { %s1028_s28 = smov 128   ;;  %s1029_s29 = smov 8  }
  0x12   :  { %36 = dma.hbm_to_vmem [thread:$0]  %s1160_s1, 6144, %s31_s19, [#allocation6], %s1028_s28, %s1028_s28, %s1029_s29  }
  0x13   :  { %s1030_s7 = smov [#allocation2]   ;;  %s955_s11 = scalar_lea.hbm %s1159_s0, 128 }
  0x14   :  { %s18_s8 = sshll.u32 %s1030_s7, 4  ;;  %p956_p8 = scmp.ne.s32.totalorder %s1159_s0, %s955_s11  ;;  %s19_s8 = int_to_ptr.vmem [resolvable:$true] %s18_s8 }
  0x15   :  { %p959_p9 = scmp.lt.u32.totalorder %s955_s11, %s1159_s0 }
  0x17   :  { %p961_p10 = pnand %p959_p9, %p956_p8 }
  0x19   :  { %964 = shalt.err (!%p961_p10)
}
  0x1a   :  { %s965_s16 = scalar_lea.vmem %s19_s8, 128  ;;  %p970_p12 = scmp.lt.s32.totalorder %s19_s8, %s19_s8 }
  0x1b   :  { %p966_p11 = scmp.ne.s32.totalorder %s19_s8, %s965_s16  ;;  %p971_p13 = scmp.lt.s32.totalorder %s965_s16, %s965_s16 }
  0x1d   :  { %p972_p0 = por %p971_p13, %p970_p12 }
  0x1f   :  { %p973_p1 = pnand %p972_p0, %p966_p11 }
  0x21   :  { %976 = shalt.err (!%p973_p1)
}
  0x22   :  { %s1031_s1 = smov 64   ;;  %s1032_s17 = smov 4  }
  0x23   :  { %24 = dma.hbm_to_vmem [thread:$0]  %s1159_s0, 128, %s19_s8, [#allocation3], %s1031_s1, %s1031_s1, %s1032_s17  }
  0x24   :  { %s1033_s20 = smov [#allocation7]   ;;  %s977_s24 = scalar_lea.hbm %s1162_s3, 1024 }
  0x25   :  { %s44_s21 = sshll.u32 %s1033_s20, 4  ;;  %p978_p2 = scmp.ne.s32.totalorder %s1162_s3, %s977_s24  ;;  %s45_s21 = int_to_ptr.vmem [resolvable:$true] %s44_s21 }
  0x26   :  { %p981_p3 = scmp.lt.u32.totalorder %s977_s24, %s1162_s3 }
  0x28   :  { %p983_p4 = pnand %p981_p3, %p978_p2 }
  0x2a   :  { %986 = shalt.err (!%p983_p4)
}
  0x2b   :  { %s987_s6 = scalar_lea.vmem %s45_s21, 1024  ;;  %p992_p6 = scmp.lt.s32.totalorder %s45_s21, %s45_s21 }
  0x2c   :  { %p988_p5 = scmp.ne.s32.totalorder %s45_s21, %s987_s6  ;;  %p993_p7 = scmp.lt.s32.totalorder %s987_s6, %s987_s6 }
  0x2e   :  { %p994_p8 = por %p993_p7, %p992_p6 }
  0x30   :  { %p995_p9 = pnand %p994_p8, %p988_p5 }
  0x32   :  { %998 = shalt.err (!%p995_p9)
}
  0x33   :  { %50 = dma.hbm_to_vmem [thread:$0]  %s1162_s3, 1024, %s45_s21, [#allocation6], %s1031_s1, %s1031_s1, %s1032_s17  }
  0x34   :  { %1021 = dma.done.wait [#allocation3], 128  }
  0x35   :  { %1022 = vsyncadd [#allocation3], 4294967168 }
  0x36   :  { %1023 = dma.done.wait [#allocation6], 7168  }
  0x37   :  { %1024 = vsyncadd [#allocation6], 4294960128  ;;  %v1034_v0 = vmov 0   ;;  %v831_v1 = vld [vmem:[#allocation5 + $0x4] ss:$8 sps:$4 sm:$0xff]   ;;  %v1107_v19 = vld [vmem:[#allocation2] sm:$0xff]   ;;  %v85_v36 = vlaneseq }
  0x38   :  { %213 = vmatprep.mubr.bf16.mxu0 %v1034_v0  ;;  %383 = vmatprep.mubr.bf16.mxu1 %v1034_v0  ;;  %v833_v2 = vld [vmem:[#allocation5] ss:$8 sps:$4 sm:$0xff]   ;;  %v834_v3 = vld [vmem:[#allocation5 + $0x14] ss:$8 sps:$4 sm:$0xff]   ;;  %v836_v4 = vld [vmem:[#allocation5 + $0x10] ss:$8 sps:$4 sm:$0xff]   ;;  %v65_v53 = vunpack.c.l.bf16 %v1107_v19  ;;  %v66_v57 = vunpack.c.h.bf16 %v1107_v19 }
  0x39   :  { %181 = vmatprep.subr.bf16.mxu0 %v831_v1  ;;  %v837_v5 = vld [vmem:[#allocation5 + $0x24] ss:$8 sps:$4 sm:$0xff]   ;;  %v839_v6 = vld [vmem:[#allocation5 + $0x20] ss:$8 sps:$4 sm:$0xff]   ;;  %v840_v7 = vld [vmem:[#allocation5 + $0x34] ss:$8 sps:$4 sm:$0xff]  }
  0x3a   :  { %182 = vmatpush1.bf16.msra.mxu0 %v833_v2  ;;  %v842_v8 = vld [vmem:[#allocation5 + $0x30] ss:$8 sps:$4 sm:$0xff]   ;;  %v856_v9 = vld [vmem:[#allocation5 + $0x84] ss:$8 sps:$4 sm:$0xff]   ;;  %v858_v11 = vld [vmem:[#allocation5 + $0x80] ss:$8 sps:$4 sm:$0xff]  }
  0x3b   :  { %183 = vmatprep.subr.bf16.mxu0 %v834_v3  ;;  %v843_v10 = vld [vmem:[#allocation5 + $0x44] ss:$8 sps:$4 sm:$0xff]   ;;  %v845_v12 = vld [vmem:[#allocation5 + $0x40] ss:$8 sps:$4 sm:$0xff]   ;;  %351 = vmatprep.subr.bf16.mxu1 %v856_v9  ;;  %v846_v13 = vld [vmem:[#allocation5 + $0x54] ss:$8 sps:$4 sm:$0xff]  }
  0x3c   :  { %352 = vmatpush1.bf16.msra.mxu1 %v858_v11  ;;  %v848_v14 = vld [vmem:[#allocation5 + $0x50] ss:$8 sps:$4 sm:$0xff]   ;;  %v849_v15 = vld [vmem:[#allocation5 + $0x64] ss:$8 sps:$4 sm:$0xff]   ;;  %v851_v16 = vld [vmem:[#allocation5 + $0x60] ss:$8 sps:$4 sm:$0xff]  }
  0x3d   :  { %v852_v17 = vld [vmem:[#allocation5 + $0x74] ss:$8 sps:$4 sm:$0xff]   ;;  %v854_v18 = vld [vmem:[#allocation5 + $0x70] ss:$8 sps:$4 sm:$0xff]   ;;  %v862_v22 = vld [vmem:[#allocation5 + $0xa4] ss:$8 sps:$4 sm:$0xff]  }
  0x3e   :  { %184 = vmatpush1.bf16.msra.mxu0 %v836_v4  ;;  %v859_v20 = vld [vmem:[#allocation5 + $0x94] ss:$8 sps:$4 sm:$0xff]   ;;  %v861_v21 = vld [vmem:[#allocation5 + $0x90] ss:$8 sps:$4 sm:$0xff]   ;;  %v864_v23 = vld [vmem:[#allocation5 + $0xa0] ss:$8 sps:$4 sm:$0xff]  }
  0x3f   :  { %185 = vmatprep.subr.bf16.mxu0 %v837_v5  ;;  %353 = vmatprep.subr.bf16.mxu1 %v859_v20  ;;  %v865_v24 = vld [vmem:[#allocation5 + $0xb4] ss:$8 sps:$4 sm:$0xff]   ;;  %v867_v25 = vld [vmem:[#allocation5 + $0xb0] ss:$8 sps:$4 sm:$0xff]   ;;  %v868_v26 = vld [vmem:[#allocation5 + $0xc4] ss:$8 sps:$4 sm:$0xff]  }
  0x40   :  { %354 = vmatpush1.bf16.msra.mxu1 %v861_v21  ;;  %v870_v27 = vld [vmem:[#allocation5 + $0xc0] ss:$8 sps:$4 sm:$0xff]   ;;  %v871_v28 = vld [vmem:[#allocation5 + $0xd4] ss:$8 sps:$4 sm:$0xff]   ;;  %v873_v29 = vld [vmem:[#allocation5 + $0xd0] ss:$8 sps:$4 sm:$0xff]  }
  0x41   :  { %355 = vmatprep.subr.bf16.mxu1 %v862_v22  ;;  %v874_v30 = vld [vmem:[#allocation5 + $0xe4] ss:$8 sps:$4 sm:$0xff]   ;;  %v876_v31 = vld [vmem:[#allocation5 + $0xe0] ss:$8 sps:$4 sm:$0xff]   ;;  %v877_v32 = vld [vmem:[#allocation5 + $0xf4] ss:$8 sps:$4 sm:$0xff]  }
  0x42   :  { %186 = vmatpush1.bf16.msra.mxu0 %v839_v6  ;;  %v879_v33 = vld [vmem:[#allocation5 + $0xf0] ss:$8 sps:$4 sm:$0xff]   ;;  %v880_v34 = vld [vmem:[#allocation5 + $0x100] ss:$8 sps:$4 sm:$0xff]   ;;  %v882_v35 = vld [vmem:[#allocation5 + $0x104] ss:$8 sps:$4 sm:$0xff]  }
  0x43   :  { %187 = vmatprep.subr.bf16.mxu0 %v840_v7  ;;  %v86_v37 = vshrl.u32 %v85_v36, 7  ;;  %v83_v39 = vld [vmem:[%s1161_s2] sm:$0x3]  ;;  %v885_v6 = vld [vmem:[#allocation5 + $0x114] ss:$8 sps:$4 sm:$0xff]   ;;  %v904_v20 = vld [vmem:[#allocation7] sm:$0xff]  }
  0x44   :  { %356 = vmatpush1.bf16.msra.mxu1 %v864_v23  ;;  %v883_v7 = vld [vmem:[#allocation5 + $0x110] ss:$8 sps:$4 sm:$0xff]   ;;  %v886_v9 = vld [vmem:[#allocation5 + $0x120] ss:$8 sps:$4 sm:$0xff]   ;;  %v1035_v21 = vmov 0.0   ;;  %vm1036_vm0 = vmmov 0  }
  0x45   :  { %357 = vmatprep.subr.bf16.mxu1 %v865_v24  ;;  %v1110_v38 = vsub.s32 0, %v86_v37  ;;  %v1116_v44 = vsub.s32 1, %v86_v37  ;;  %v889_v11 = vld [vmem:[#allocation5 + $0x130] ss:$8 sps:$4 sm:$0xff]  }
  0x46   :  { %188 = vmatpush1.bf16.msra.mxu0 %v842_v8  ;;  %v888_v8 = vld [vmem:[#allocation5 + $0x124] ss:$8 sps:$4 sm:$0xff]   ;;  %v748_v22 = vld [vmem:[%s1161_s2 + $0x2] sm:$0x3] }
  0x47   :  { %189 = vmatprep.subr.bf16.mxu0 %v843_v10  ;;  %v88_v40 = vrot.slane %v83_v39, %v1110_v38  ;;  %v92_v50 = vrot.slane %v83_v39, %v1116_v44  ;;  %v891_v10 = vld [vmem:[#allocation5 + $0x134] ss:$8 sps:$4 sm:$0xff]   ;;  %v264_v23 = vrot.slane %v748_v22, %v1110_v38 }
  0x48   :  { %358 = vmatpush1.bf16.msra.mxu1 %v867_v25 }
  0x49   :  { %359 = vmatprep.subr.bf16.mxu1 %v868_v26 }
  0x4a   :  { %190 = vmatpush1.bf16.msra.mxu0 %v845_v12  ;;  %v894_v12 = vld [vmem:[#allocation5 + $0x144] ss:$8 sps:$4 sm:$0xff]  }
  0x4b   :  { %191 = vmatprep.subr.bf16.mxu0 %v846_v13  ;;  %v892_v13 = vld [vmem:[#allocation5 + $0x140] ss:$8 sps:$4 sm:$0xff]  }
  0x4c   :  { %360 = vmatpush1.bf16.msra.mxu1 %v870_v27 }
  0x4d   :  { %361 = vmatprep.subr.bf16.mxu1 %v871_v28 }
  0x4e   :  { %192 = vmatpush1.bf16.msra.mxu0 %v848_v14  ;;  %v897_v14 = vld [vmem:[#allocation5 + $0x154] ss:$8 sps:$4 sm:$0xff]  }
  0x4f   :  { %193 = vmatprep.subr.bf16.mxu0 %v849_v15  ;;  %v895_v15 = vld [vmem:[#allocation5 + $0x150] ss:$8 sps:$4 sm:$0xff]  }
  0x50   :  { %362 = vmatpush1.bf16.msra.mxu1 %v873_v29 }
  0x51   :  { %363 = vmatprep.subr.bf16.mxu1 %v874_v30 }
  0x52   :  { %194 = vmatpush1.bf16.msra.mxu0 %v851_v16  ;;  %v900_v16 = vld [vmem:[#allocation5 + $0x164] ss:$8 sps:$4 sm:$0xff]  }
  0x53   :  { %195 = vmatprep.subr.bf16.mxu0 %v852_v17  ;;  %v898_v17 = vld [vmem:[#allocation5 + $0x160] ss:$8 sps:$4 sm:$0xff]  }
  0x54   :  { %364 = vmatpush1.bf16.msra.mxu1 %v876_v31 }
  0x55   :  { %365 = vmatprep.subr.bf16.mxu1 %v877_v32  ;;  %v268_v32 = vrot.slane %v748_v22, %v1116_v44 }
  0x56   :  { %196 = vmatpush1.bf16.msra.mxu0 %v854_v18  ;;  %v903_v18 = vld [vmem:[#allocation5 + $0x174] ss:$8 sps:$4 sm:$0xff]  }
  0x57   :  { %521 = vmatprep.subr.bf16.mxu0 %v882_v35 }
  0x58   :  { %366 = vmatpush1.bf16.msra.mxu1 %v879_v33 }
  0x59   :  { %214 = vmatmul.mubr.bf16.vlgmr.msra.gmra.mrb[0].mxu0 %v1107_v19  ;;  %v901_v19 = vld [vmem:[#allocation5 + $0x170] ss:$8 sps:$4 sm:$0xff]   ;;  %800 = vmatprep.subr.bf16.mxu1 %v1035_v21 }
  0x5a   :  { %553 = vmatprep.mubr.bf16.mxu0 %v1034_v0  ;;  %522 = vmatpush1.bf16.msra.mxu0 %v880_v34 }
  0x5b   :  { %523 = vmatprep.subr.bf16.mxu0 %v885_v6 }
  0x5e   :  { %524 = vmatpush1.bf16.msra.mxu0 %v883_v7 }
  0x5f   :  { %525 = vmatprep.subr.bf16.mxu0 %v888_v8 }
  0x62   :  { %526 = vmatpush1.bf16.msra.mxu0 %v886_v9 }
  0x63   :  { %527 = vmatprep.subr.bf16.mxu0 %v891_v10 }
  0x66   :  { %528 = vmatpush1.bf16.msra.mxu0 %v889_v11 }
  0x67   :  { %529 = vmatprep.subr.bf16.mxu0 %v894_v12 }
  0x6a   :  { %530 = vmatpush1.bf16.msra.mxu0 %v892_v13 }
  0x6b   :  { %531 = vmatprep.subr.bf16.mxu0 %v897_v14 }
  0x6e   :  { %532 = vmatpush1.bf16.msra.mxu0 %v895_v15 }
  0x6f   :  { %533 = vmatprep.subr.bf16.mxu0 %v900_v16 }
  0x72   :  { %534 = vmatpush1.bf16.msra.mxu0 %v898_v17 }
  0x73   :  { %535 = vmatprep.subr.bf16.mxu0 %v903_v18 }
  0x76   :  { %536 = vmatpush1.bf16.msra.mxu0 %v901_v19 }
 0x12c   :  { %v215_v41 = vpop.f32.mrb[0].mxu0 }
 0x12d   :  { %v216_v42 = vadd.f32 %v215_v41, %v88_v40  ;;  %v217_v43 = vpop.f32.mrb[1].mxu0 }
 0x12e   :  { %v219_v45 = vpop.f32.mrb[2].mxu0  ;;  %v218_v51 = vadd.f32 %v217_v43, %v92_v50 }
 0x12f   :  { %v224_v46 = vmul.f32 0.5, %v216_v42  ;;  %v220_v47 = vadd.f32 %v219_v45, %v88_v40  ;;  %v221_v48 = vpop.f32.mrb[3].mxu0 }
 0x130   :  { %v222_v52 = vadd.f32 %v221_v48, %v92_v50  ;;  %v232_v54 = vmax.f32 %v218_v51, 0.0 }
 0x131   :  { %913 = vtanh.f32 %v224_v46  ;;  %v225_v49 = vmul.f32 0.5, %v220_v47 }
 0x132   :  { %v233_v58 = vmax.f32 %v222_v52, 0.0  ;;  %v234_v61 = vsub.f32 %v232_v54, %v65_v53  ;;  %v905_v52 = vld [vmem:[#allocation7 + $0x8] sm:$0xff]   ;;  %v907_v54 = vld [vmem:[#allocation7 + $0x18] sm:$0xff]  }
 0x133   :  { %915 = vtanh.f32 %v225_v49 }
 0x134   :  { %v235_v1 = vsub.f32 %v233_v58, %v66_v57  ;;  %v911_v58 = vld [vmem:[#allocation7 + $0x38] sm:$0xff]  }
 0x13b   :  { %v914_v55 = vpop.eup %913 }
 0x13c   :  { %v228_v56 = vmul.f32 0.5, %v914_v55  ;;  %v908_v55 = vld [vmem:[#allocation7 + $0x20] sm:$0xff]  }
 0x13d   :  { %v916_v59 = vpop.eup %915 }
 0x13e   :  { %v230_v60 = vadd.f32 0.5, %v228_v56  ;;  %v229_v62 = vmul.f32 0.5, %v916_v59  ;;  %v909_v56 = vld [vmem:[#allocation7 + $0x28] sm:$0xff]   ;;  %v765_v59 = vld [vmem:[%s1161_s2 + $0x4] sm:$0x3] }
 0x140   :  { %v236_v63 = vmul.f32 %v234_v61, %v230_v60  ;;  %v231_v0 = vadd.f32 0.5, %v229_v62  ;;  %v434_v60 = vrot.slane %v765_v59, %v1110_v38 }
 0x142   :  { %v237_v2 = vmul.f32 %v235_v1, %v231_v0  ;;  %v1121_v3 = vadd.f32 %v236_v63, %v65_v53  ;;  %v906_v53 = vld [vmem:[#allocation7 + $0x10] sm:$0xff]  }
 0x144   :  { %v1123_v4 = vadd.f32 %v237_v2, %v66_v57  ;;  %v910_v57 = vld [vmem:[#allocation7 + $0x30] sm:$0xff]  }
 0x146   :  { %v259_v5 = vpack.c.bf16 %v1123_v4, %v1121_v3 }
 0x148   :  { %384 = vmatmul.mubr.bf16.vlgmr.msra.gmra.mrb[0].mxu1 %v259_v5  ;;  %v438_v5 = vrot.slane %v765_v59, %v1116_v44  ;;  %v782_v44 = vld [vmem:[%s1163_s4] ss:$0 sm:$0xff]  ;;  %s1037_s4 = smov [#allocation8]  }
 0x149   :  { %801 = vmatpush3.bf16.msra.mxu1 %v904_v20  ;;  %816 = vmatprep.mubr.msk.bf16.mxu1 %vm1036_vm0, %v1035_v21  ;;  %s718_s14 = sshll.u32 %s1037_s4, 4  ;;  %s719_s14 = int_to_ptr.vmem [resolvable:$true] %s718_s14 }
 0x14a   :  { %802 = vmatprep.subr.bf16.mxu1 %v1035_v21  ;;  %s999_s15 = scalar_lea.vmem %s719_s14, 256  ;;  %p1004_p11 = scmp.lt.s32.totalorder %s719_s14, %s719_s14 }
 0x14b   :  { %p1000_p10 = scmp.ne.s32.totalorder %s719_s14, %s999_s15  ;;  %p1005_p12 = scmp.lt.s32.totalorder %s999_s15, %s999_s15 }
 0x14d   :  { %803 = vmatpush3.bf16.msra.mxu1 %v905_v52  ;;  %p1006_p13 = por %p1005_p12, %p1004_p11 }
 0x14e   :  { %804 = vmatprep.subr.bf16.mxu1 %v1035_v21 }
 0x14f   :  { %p1007_p0 = pnand %p1006_p13, %p1000_p10 }
 0x151   :  { %805 = vmatpush3.bf16.msra.mxu1 %v906_v53 }
 0x152   :  { %806 = vmatprep.subr.bf16.mxu1 %v1035_v21 }
 0x155   :  { %807 = vmatpush3.bf16.msra.mxu1 %v907_v54 }
 0x156   :  { %808 = vmatprep.subr.bf16.mxu1 %v1035_v21 }
 0x159   :  { %809 = vmatpush3.bf16.msra.mxu1 %v908_v55 }
 0x15a   :  { %810 = vmatprep.subr.bf16.mxu1 %v1035_v21 }
 0x15d   :  { %811 = vmatpush3.bf16.msra.mxu1 %v909_v56 }
 0x15e   :  { %812 = vmatprep.subr.bf16.mxu1 %v1035_v21 }
 0x161   :  { %813 = vmatpush3.bf16.msra.mxu1 %v910_v57 }
 0x162   :  { %814 = vmatprep.subr.bf16.mxu1 %v1035_v21 }
 0x165   :  { %815 = vmatpush3.bf16.msra.mxu1 %v911_v58 }
 0x21b   :  { %v385_v24 = vpop.f32.mrb[0].mxu1 }
 0x21c   :  { %v386_v25 = vadd.f32 %v385_v24, %v264_v23  ;;  %v387_v26 = vpop.f32.mrb[1].mxu1 }
 0x21d   :  { %v389_v27 = vpop.f32.mrb[2].mxu1  ;;  %v388_v33 = vadd.f32 %v387_v26, %v268_v32 }
 0x21e   :  { %v394_v28 = vmul.f32 0.5, %v386_v25  ;;  %v390_v29 = vadd.f32 %v389_v27, %v264_v23  ;;  %v391_v30 = vpop.f32.mrb[3].mxu1 }
 0x21f   :  { %v392_v34 = vadd.f32 %v391_v30, %v268_v32  ;;  %v402_v35 = vmax.f32 %v388_v33, 0.0 }
 0x220   :  { %917 = vtanh.f32 %v394_v28  ;;  %v395_v31 = vmul.f32 0.5, %v390_v29 }
 0x221   :  { %v403_v39 = vmax.f32 %v392_v34, 0.0  ;;  %v404_v42 = vsub.f32 %v402_v35, %v1121_v3 }
 0x222   :  { %919 = vtanh.f32 %v395_v31 }
 0x223   :  { %v405_v47 = vsub.f32 %v403_v39, %v1123_v4 }
 0x22a   :  { %v918_v36 = vpop.eup %917 }
 0x22b   :  { %v398_v37 = vmul.f32 0.5, %v918_v36 }
 0x22c   :  { %v920_v40 = vpop.eup %919 }
 0x22d   :  { %v400_v41 = vadd.f32 0.5, %v398_v37  ;;  %v399_v43 = vmul.f32 0.5, %v920_v40 }
 0x22f   :  { %v406_v45 = vmul.f32 %v404_v42, %v400_v41  ;;  %v401_v46 = vadd.f32 0.5, %v399_v43 }
 0x231   :  { %v407_v48 = vmul.f32 %v405_v47, %v401_v46  ;;  %v408_v49 = vadd.f32 %v406_v45, %v1121_v3 }
 0x233   :  { %v409_v50 = vadd.f32 %v407_v48, %v1123_v4 }
 0x235   :  { %v429_v51 = vpack.c.bf16 %v409_v50, %v408_v49 }
 0x237   :  { %554 = vmatmul.mubr.bf16.vlgmr.msra.gmra.mrb[4].mxu0 %v429_v51 }
 0x30a   :  { %v555_v61 = vpop.f32.mrb[4].mxu0 }
 0x30b   :  { %v556_v62 = vadd.f32 %v555_v61, %v434_v60  ;;  %v557_v63 = vpop.f32.mrb[5].mxu0 }
 0x30c   :  { %v559_v0 = vpop.f32.mrb[6].mxu0  ;;  %v558_v6 = vadd.f32 %v557_v63, %v438_v5 }
 0x30d   :  { %v564_v1 = vmul.f32 0.5, %v556_v62  ;;  %v560_v2 = vadd.f32 %v559_v0, %v434_v60  ;;  %v561_v3 = vpop.f32.mrb[7].mxu0 }
 0x30e   :  { %v562_v7 = vadd.f32 %v561_v3, %v438_v5  ;;  %v572_v8 = vmax.f32 %v558_v6, 0.0 }
 0x30f   :  { %921 = vtanh.f32 %v564_v1  ;;  %v565_v4 = vmul.f32 0.5, %v560_v2 }
 0x310   :  { %v573_v11 = vmax.f32 %v562_v7, 0.0  ;;  %v574_v13 = vsub.f32 %v572_v8, %v408_v49 }
 0x311   :  { %923 = vtanh.f32 %v565_v4 }
 0x312   :  { %v575_v17 = vsub.f32 %v573_v11, %v409_v50 }
 0x319   :  { %v922_v9 = vpop.eup %921 }
 0x31a   :  { %v568_v10 = vmul.f32 0.5, %v922_v9 }
 0x31b   :  { %v924_v12 = vpop.eup %923 }
 0x31c   :  { %v570_v38 = vadd.f32 0.5, %v568_v10  ;;  %v569_v14 = vmul.f32 0.5, %v924_v12 }
 0x31e   :  { %v576_v15 = vmul.f32 %v574_v13, %v570_v38  ;;  %v571_v16 = vadd.f32 0.5, %v569_v14 }
 0x320   :  { %v577_v18 = vmul.f32 %v575_v17, %v571_v16  ;;  %v578_v19 = vadd.f32 %v576_v15, %v408_v49 }
 0x322   :  { %v579_v20 = vadd.f32 %v577_v18, %v409_v50 }
 0x324   :  { %v580_v21 = vpack.c.bf16 %v579_v20, %v578_v19 }
 0x326   :  { %817 = vmatmul.mubr.bf16.vlgmr.msra.gmra.mrb[4].mxu1 %v580_v21 }
 0x3f9   :  { %v686_v22 = vpop.f32.mrb[4].mxu1 }
 0x3fa   :  { %v687_v23 = vadd.f32 %v782_v44, %v686_v22  ;;  %v818_v24 = vpop.f32.mrb[5].mxu1 }
 0x3fb   :  { %v689_v25 = vpop.f32.mrb[6].mxu1 }
 0x3fc   :  { %693 = vmax.xlane.f32.xlu0 %v687_v23  ;;  %v819_v26 = vpop.f32.mrb[7].mxu1  ;;  %v690_v27 = vadd.f32 %v782_v44, %v689_v25 }
 0x400   :  { %695 = vmax.xlane.f32.xlu0 %v690_v27 }
 0x489   :  { %v694_v28 = vpop.xlane.xlu0 %693 }
 0x48a   :  { %v697_v29 = vsub.f32 %v687_v23, %v694_v28 }
 0x48c   :  { %v699_v30 = vmul.f32 1.442695, %v697_v29 }
 0x48d   :  { %v696_v31 = vpop.xlane.xlu0 %695 }
 0x48e   :  { %925 = vpow2.f32 %v699_v30  ;;  %v698_v32 = vsub.f32 %v690_v27, %v696_v31 }
 0x490   :  { %v701_v33 = vmul.f32 1.442695, %v698_v32 }
 0x492   :  { %927 = vpow2.f32 %v701_v33 }
 0x498   :  { %v926_v34 = vpop.eup %925 }
 0x499   :  { %703 = vadd.xlane.f32.xlu1 %v926_v34 }
 0x49c   :  { %v928_v35 = vpop.eup %927 }
 0x49d   :  { %705 = vadd.xlane.f32.xlu1 %v928_v35 }
 0x526   :  { %v704_v36 = vpop.xlane.xlu1 %703 }
 0x527   :  { %929 = vrcp.f32 %v704_v36 }
 0x52a   :  { %v706_v37 = vpop.xlane.xlu1 %705 }
 0x52b   :  { %931 = vrcp.f32 %v706_v37 }
 0x531   :  { %v930_v39 = vpop.eup %929 }
 0x532   :  { %v709_v40 = vmul.f32 %v930_v39, %v926_v34 }
 0x534   :  { %711 = vst [vmem:[#allocation8] sm:$0xff] %v709_v40 }
 0x535   :  { %v932_v41 = vpop.eup %931 }
 0x536   :  { %v710_v42 = vmul.f32 %v932_v41, %v928_v35 }
 0x538   :  { %712 = vst [vmem:[#allocation8 + $0x8] sm:$0xff] %v710_v42 }
 0x539   :  { %1010 = shalt.err (!%p1007_p0)
}
 0x53a   :  { %s1011_s17 = scalar_lea.hbm %s1164_s5, 256 }
 0x53b   :  { %p1012_p1 = scmp.ne.s32.totalorder %s1164_s5, %s1011_s17  ;;  %p1015_p2 = scmp.lt.u32.totalorder %s1011_s17, %s1164_s5 }
 0x53d   :  { %p1017_p3 = pnand %p1015_p2, %p1012_p1 }
 0x53f   :  { %1020 = shalt.err (!%p1017_p3)
}
 0x540   :  { %724 = dma.vmem_to_hbm [thread:$0]  %s719_s14, 256, %s1164_s5, [#allocation4], %s1028_s28, %s1028_s28, %s1029_s29  }
 0x541   :  { %1025 = dma.done.wait [#allocation4], 256  }
 0x542   :  { %1026 = vsyncadd [#allocation4], 4294967040 }
 0x543   :  { %728 = vsyncpa [#allocation3], 1 }
 0x544   :  { %729 = vsyncpa [#allocation6], 1 }
 0x545   :  { %730 = vsyncpa [#allocation4], 1 }

</bundles_post_ra>
